<compile_context>
chip_gen: v6e
topology: v6e:2x2x1
jax: 0.10.0
libtpu: 0.0.40
codegen_flags: <defaults>
</compile_context>

<pallas_src>
import functools

import jax
import jax.numpy as jnp
from jax.experimental import pallas as pl
from jax.experimental.pallas import tpu as pltpu


def _round_up(n, m):
    return ((n + m - 1) // m) * m


def _center_loss_kernel(x_ref, c_ref, out_ref, acc_ref, *, batch, tile):
    # x_ref:   VMEM (TB, D) feature rows for this tile
    # c_ref:   VMEM (TB, D) gathered center rows (centers[labels]) for this tile
    # out_ref: VMEM (1, 1) f32 output (resident across the whole grid)
    # acc_ref: VMEM (1, 1) f32 scratch accumulator
    i = pl.program_id(0)

    @pl.when(i == 0)
    def _init():
        acc_ref[...] = jnp.zeros_like(acc_ref)

    d = x_ref[...].astype(jnp.float32) - c_ref[...].astype(jnp.float32)  # (TB, D)
    dist = jnp.sum(d * d, axis=-1, keepdims=True)                        # (TB, 1)
    dist = jnp.clip(dist, 1e-12, 1e12)   # torch.clamp(min=1e-12, max=1e12)

    # Mask rows of the (zero-padded) final partial tile so the mean is exact.
    row = i * tile + jax.lax.broadcasted_iota(jnp.int32, dist.shape, 0)
    dist = jnp.where(row < batch, dist, 0.0)

    acc_ref[...] += jnp.sum(dist)

    @pl.when(i == pl.num_programs(0) - 1)
    def _finalize():
        out_ref[...] = acc_ref[...] * (1.0 / batch)   # mean over the batch axis


def center_loss(x, centers, labels):
    """x: (B, D), centers: (C, D), labels: (B,) int -> scalar f32 loss."""
    B, D = x.shape

    # Row gather in the wrapper: only the B needed center rows are ever
    # touched; the (C, D) table is never padded or streamed into the kernel.
    c_rows = jnp.take(centers, labels.astype(jnp.int32), axis=0)   # (B, D)

    # Batch tile: sublane-dense (>= 8 rows), up to 256 rows per grid step.
    TB = min(256, _round_up(B, 8))
    B_pad = _round_up(B, TB)
    if B_pad != B:
        x = jnp.pad(x, ((0, B_pad - B), (0, 0)))
        c_rows = jnp.pad(c_rows, ((0, B_pad - B), (0, 0)))

    grid_spec = pltpu.PrefetchScalarGridSpec(
        num_scalar_prefetch=0,
        grid=(B_pad // TB,),                       # reduction over batch tiles
        in_specs=[
            # Full-extent last dim (== D), so no lane padding in HBM.
            pl.BlockSpec((TB, D), lambda i: (i, 0)),   # x tile
            pl.BlockSpec((TB, D), lambda i: (i, 0)),   # gathered centers tile
        ],
        out_specs=pl.BlockSpec((1, 1), lambda i: (0, 0)),   # resident output
        scratch_shapes=[pltpu.VMEM((1, 1), jnp.float32)],   # f32 accumulator
    )

    out = pl.pallas_call(
        functools.partial(_center_loss_kernel, batch=B, tile=TB),
        out_shape=jax.ShapeDtypeStruct((1, 1), jnp.float32),
        grid_spec=grid_spec,
        compiler_params=pltpu.CompilerParams(
            dimension_semantics=("arbitrary",)),
    )(x, c_rows)
    return out[0, 0]


if __name__ == "__main__":
    key = jax.random.PRNGKey(0)

    def run_case(num_classes, feat_dim, batch, case_key):
        k_c, k_x, k_l = jax.random.split(case_key, 3)
        # nn.Parameter(torch.randn(num_classes, num_features)) -> normal init.
        centers = jax.random.normal(k_c, (num_classes, feat_dim), dtype=jnp.float32)
        x = jax.random.normal(k_x, (batch, feat_dim), dtype=jnp.float32)
        labels = jax.random.randint(k_l, (batch,), 0, num_classes, dtype=jnp.int32)

        loss = center_loss(x, centers, labels)
        jax.block_until_ready(loss)

        # Plain-JAX reference of the same forward.
        ref = jnp.mean(
            jnp.clip(jnp.sum((x - centers[labels]) ** 2, axis=-1), 1e-12, 1e12))
        assert jnp.allclose(loss, ref, rtol=1e-5, atol=1e-6), (loss, ref)

    k0, k1, k2 = jax.random.split(key, 3)
    # Module defaults: num_classes=10, feat_dim=2 (no lane padding in HBM).
    run_case(num_classes=10, feat_dim=2, batch=8, case_key=k0)
    # A lane-aligned config, small.
    run_case(num_classes=64, feat_dim=256, batch=16, case_key=k1)
    # Ragged batch: exercises the zero-padded + masked final tile path.
    run_case(num_classes=10, feat_dim=2, batch=13, case_key=k2)

    print("KERNEL_OK")
</pallas_src>

<mosaic_0001>
module attributes {stable_mosaic.version = 11 : i64} {
  func.func @_center_loss_kernel(%arg0: i32, %arg1: memref<8x2xf32, #tpu.memory_space<vmem>>, %arg2: memref<8x2xf32, #tpu.memory_space<vmem>>, %arg3: memref<1x1xf32, #tpu.memory_space<vmem>>, %arg4: memref<1x1xf32, #tpu.memory_space<vmem>>) attributes {dimension_semantics = [#tpu.dimension_semantics<arbitrary>], iteration_bounds = array<i64: 1>, scalar_prefetch = 0 : i64, scratch_operands = 1 : i64, tpu.core_type = #tpu.core_type<tc>, window_params = [{transform_indices = @transform_0, window_bounds = array<i64: 8, 2>}, {transform_indices = @transform_1, window_bounds = array<i64: 8, 2>}, {pipeline_mode = #tpu.pipeline_mode<synchronous>, transform_indices = @transform_2, window_bounds = array<i64: 1, 1>}]} {
    %c0_i32 = arith.constant 0 : i32
    %0 = arith.cmpi eq, %arg0, %c0_i32 : i32
    %1 = arith.extui %0 : i1 to i32
    %c0_i32_0 = arith.constant 0 : i32
    %2 = arith.cmpi ne, %1, %c0_i32_0 : i32
    scf.if %2 {
      %cst_15 = arith.constant 0.000000e+00 : f32
      %32 = vector.broadcast %cst_15 : f32 to vector<1x1xf32>
      %c0_16 = arith.constant 0 : index
      %c0_17 = arith.constant 0 : index
      %33 = vector.load %arg4[%c0_16, %c0_17] : memref<1x1xf32, #tpu.memory_space<vmem>>, vector<1x1xf32>
      tpu.vector_store %arg4[%c0_16, %c0_17], %32 {strides = array<i32>} : memref<1x1xf32, #tpu.memory_space<vmem>>, vector<1x1xf32>,
    } else {
    }
    %c0 = arith.constant 0 : index
    %c0_1 = arith.constant 0 : index
    %3 = vector.load %arg1[%c0, %c0_1] : memref<8x2xf32, #tpu.memory_space<vmem>>, vector<8x2xf32>
    %c0_2 = arith.constant 0 : index
    %c0_3 = arith.constant 0 : index
    %4 = vector.load %arg2[%c0_2, %c0_3] : memref<8x2xf32, #tpu.memory_space<vmem>>, vector<8x2xf32>
    %5 = arith.subf %3, %4 : vector<8x2xf32>
    %6 = arith.mulf %5, %5 : vector<8x2xf32>
    %cst = arith.constant dense<0.000000e+00> : vector<8xf32>
    %7 = vector.multi_reduction <add>, %6, %cst [1] : vector<8x2xf32> to vector<8xf32>
    %8 = vector.shape_cast %7 : vector<8xf32> to vector<8x1xf32>
    %cst_4 = arith.constant 9.99999996E-13 : f32
    %cst_5 = arith.constant 9.99999995E+11 : f32
    %9 = vector.broadcast %cst_4 : f32 to vector<8x1xf32>
    %10 = arith.maximumf %9, %8 : vector<8x1xf32>
    %11 = vector.broadcast %cst_5 : f32 to vector<8x1xf32>
    %12 = arith.minimumf %11, %10 : vector<8x1xf32>
    %c8_i32 = arith.constant 8 : i32
    %13 = arith.muli %arg0, %c8_i32 : i32
    %14 = tpu.iota {dimensions = array<i32: 0>} : vector<8x1xi32>
    %15 = vector.broadcast %13 : i32 to vector<8x1xi32>
    %16 = arith.addi %15, %14 : vector<8x1xi32>
    %c8_i32_6 = arith.constant 8 : i32
    %17 = vector.broadcast %c8_i32_6 : i32 to vector<8x1xi32>
    %18 = arith.cmpi slt, %16, %17 : vector<8x1xi32>
    %cst_7 = arith.constant 0.000000e+00 : f32
    %19 = vector.broadcast %cst_7 : f32 to vector<8x1xf32>
    %20 = arith.select %18, %12, %19 : vector<8x1xi1>, vector<8x1xf32>
    %c0_8 = arith.constant 0 : index
    %c0_9 = arith.constant 0 : index
    %21 = vector.load %arg4[%c0_8, %c0_9] : memref<1x1xf32, #tpu.memory_space<vmem>>, vector<1x1xf32>
    %22 = vector.shape_cast %20 : vector<8x1xf32> to vector<1x8x1xf32>
    %cst_10 = arith.constant dense<0.000000e+00> : vector<1xf32>
    %23 = vector.multi_reduction <add>, %22, %cst_10 [1, 2] : vector<1x8x1xf32> to vector<1xf32>
    %24 = vector.shape_cast %23 : vector<1xf32> to vector<1x1x1xf32>
    %25 = vector.extract %24[0, 0, 0] : f32 from vector<1x1x1xf32>
    %26 = vector.broadcast %25 : f32 to vector<1x1xf32>
    %27 = arith.addf %21, %26 : vector<1x1xf32>
    %c0_11 = arith.constant 0 : index
    %c0_12 = arith.constant 0 : index
    %28 = vector.load %arg4[%c0_11, %c0_12] : memref<1x1xf32, #tpu.memory_space<vmem>>, vector<1x1xf32>
    tpu.vector_store %arg4[%c0_11, %c0_12], %27 {strides = array<i32>} : memref<1x1xf32, #tpu.memory_space<vmem>>, vector<1x1xf32>,
    %c0_i32_13 = arith.constant 0 : i32
    %29 = arith.cmpi eq, %arg0, %c0_i32_13 : i32
    %30 = arith.extui %29 : i1 to i32
    %c0_i32_14 = arith.constant 0 : i32
    %31 = arith.cmpi ne, %30, %c0_i32_14 : i32
    scf.if %31 {
      %c0_15 = arith.constant 0 : index
      %c0_16 = arith.constant 0 : index
      %32 = vector.load %arg4[%c0_15, %c0_16] : memref<1x1xf32, #tpu.memory_space<vmem>>, vector<1x1xf32>
      %cst_17 = arith.constant 1.250000e-01 : f32
      %33 = vector.broadcast %cst_17 : f32 to vector<1x1xf32>
      %34 = arith.mulf %32, %33 : vector<1x1xf32>
      %c0_18 = arith.constant 0 : index
      %c0_19 = arith.constant 0 : index
      %35 = vector.load %arg3[%c0_18, %c0_19] : memref<1x1xf32, #tpu.memory_space<vmem>>, vector<1x1xf32>
      tpu.vector_store %arg3[%c0_18, %c0_19], %34 {strides = array<i32>} : memref<1x1xf32, #tpu.memory_space<vmem>>, vector<1x1xf32>,
    } else {
    }
    return
  }
  func.func @transform_0(%arg0: i32) -> (i32, i32) {
    %c0_i32 = arith.constant 0 : i32
    %c0_i32_0 = arith.constant 0 : i32
    return %arg0, %c0_i32 : i32, i32
  }
  func.func @transform_1(%arg0: i32) -> (i32, i32) {
    %c0_i32 = arith.constant 0 : i32
    %c0_i32_0 = arith.constant 0 : i32
    return %arg0, %c0_i32 : i32, i32
  }
  func.func @transform_2(%arg0: i32) -> (i32, i32) {
    %c0_i32 = arith.constant 0 : i32
    %c0_i32_0 = arith.constant 0 : i32
    %c0_i32_1 = arith.constant 0 : i32
    return %c0_i32, %c0_i32_0 : i32, i32
  }
}

</mosaic_0001>

<bundles_post_ra>
// kernel: tpu_custom_call.1
= control target key start
LH: loop header
LB: loop body
LE: loop exit
PB: predicated region body
PF: predicated region fallthrough
CT: control target
= control target key end

     0   :  { %s126_s0 = inlined_call_operand.vmem [shape: f32[8,2], index: 0, kind: input, shape index: {}]   ;;  %s127_s1 = inlined_call_operand.vmem [shape: f32[8,2], index: 1, kind: input, shape index: {}]   ;;  %s128_s2 = inlined_call_operand.hbm [shape: f32[1,1], index: 2, kind: output, shape index: {}]  }
   0x1   :  { %v18_v0 = vld [vmem:[%s126_s0] sm:$0xff] }
   0x2   :  { %v19_v1 = vld [vmem:[%s127_s1] sm:$0xff] }
   0x3   :  { %7 = vsyncpa [#allocation4], 0  ;;  %v20_v2 = vsub.f32 %v18_v0, %v19_v1  ;;  %vm22_vm0 = vcmask 15360   ;;  %vm36_vm1 = vcmask 7168   ;;  %vm16_vm2 = vcmask 0   ;;  %s98_s1 = smov [#allocation3]  }
   0x4   :  { %v97_v9 = vmov 0.0   ;;  %s63_s13 = sshll.u32 %s98_s1, 4  ;;  %s64_s13 = int_to_ptr.vmem [resolvable:$true] %s63_s13 }
   0x5   :  { %v21_v3 = vmul.f32 %v20_v2, %v20_v2  ;;  %17 = vst.msk [vmem:[#allocation2] sm:$0x1] %vm16_vm2, %v97_v9  ;;  %s75_s14 = scalar_lea.vmem %s64_s13, 16  ;;  %s79_s15 = scalar_lea.vmem %s64_s13, 32 }
   0x6   :  { %p76_p0 = scmp.ne.s32.totalorder %s64_s13, %s75_s14  ;;  %p80_p1 = scmp.lt.s32.totalorder %s64_s13, %s64_s13 }
   0x7   :  { %v23_v4 = vsel %vm22_vm0, %v21_v3, 0.0  ;;  %p81_p2 = scmp.lt.s32.totalorder %s79_s15, %s75_s14 }
   0x8   :  { %24 = vadd.xlane.f32.xlu0 %v23_v4 }
   0x9   :  { %p82_p3 = por %p81_p2, %p80_p1 }
   0xb   :  { %p83_p4 = pnand %p82_p3, %p76_p0 }
   0xc   :  { %v35_v17 = vld [vmem:[#allocation2] sm:$0x1] }
  0x91   :  { %v25_v5 = vpop.xlane.xlu0 %24 }
  0x92   :  { %v26_v6 = vmax.f32 %v25_v5, 1e-12 }
  0x94   :  { %v27_v7 = vmin.f32 %v26_v6, 1e+12 }
  0x96   :  { %v37_v8 = vsel %vm36_vm1, %v27_v7, 0.0 }
  0x97   :  { %38 = vadd.xlane.f32.xlu0 %v37_v8 }
 0x120   :  { %v39_v10 = vpop.xlane.xlu0 %38 }
 0x121   :  { %v40_v11 = vrot.slane %v39_v10, 4 }
 0x123   :  { %v41_v12 = vadd.f32 %v40_v11, %v39_v10 }
 0x125   :  { %v42_v13 = vrot.slane %v41_v12, 2 }
 0x127   :  { %v43_v14 = vadd.f32 %v42_v13, %v41_v12 }
 0x129   :  { %v44_v15 = vrot.slane %v43_v14, 1 }
 0x12b   :  { %v45_v16 = vadd.f32 %v44_v15, %v43_v14 }
 0x12d   :  { %71 = vpush %v45_v16 }
 0x15e   :  { %s72_s0 = spop %71 }
 0x15f   :  { %v47_v18 = vstv %s72_s0 }
 0x160   :  { %v48_v19 = vadd.f32 %v47_v18, %v35_v17 }
 0x162   :  { %50 = vst.msk [vmem:[#allocation2] sm:$0x1] %vm16_vm2, %v48_v19 }
 0x169   :  { %v54_v20 = vld [vmem:[#allocation2] sm:$0x1] }
 0x16a   :  { %v55_v21 = vmul.f32 0.125, %v54_v20 }
 0x16c   :  { %56 = vst.msk [vmem:[#allocation3] sm:$0x1] %vm16_vm2, %v55_v21 }
 0x16d   :  { %86 = shalt.err (!%p83_p4)
}
 0x16e   :  { %66 = dma.vmem_to_hbm [thread:$0]  %s64_s13, 16, %s128_s2, [#allocation4]  }
 0x16f   :  { %95 = dma.done.wait [#allocation4], 16  }
 0x170   :  { %96 = vsyncadd [#allocation4], 4294967280 }
 0x171   :  { %70 = vsyncpa [#allocation4], 1 }

</bundles_post_ra>
